<compile_context>
chip_gen: v7x
topology: tpu7x:2x2x1
jax: 0.10.0
libtpu: 0.0.40
codegen_flags: <defaults>
</compile_context>

<pallas_src>
import functools

import jax
import jax.numpy as jnp
from jax.experimental import pallas as pl
from jax.experimental.pallas import tpu as pltpu


# ---------------------------------------------------------------------------
# Per-generation sizing
# ---------------------------------------------------------------------------
def _cdiv(a, b):
    return -(-a // b)


def _round_down(v, m):
    return (v // m) * m


def _tpu_budget():
    """Returns (target_block_elems, vmem_limit_bytes, min_parallel_steps)."""
    phys_vmem = None
    try:
        info = pltpu.get_tpu_info()
        phys_vmem = int(getattr(info, "vmem_capacity_bytes", 0)) or None
    except Exception:
        phys_vmem = None
    if phys_vmem is not None and phys_vmem <= 96 * 1024 * 1024:
        # v7x-class: 64 MiB VMEM per TensorCore, 2 TCs/chip, ~3.2 TB/s HBM.
        target_f32_bytes = 4 * 1024 * 1024
        vmem_limit = min(48 * 1024 * 1024, phys_vmem - 8 * 1024 * 1024)
        min_steps = 2
    else:
        # v5e / v6e: 128 MiB VMEM, single TC -> biggest blocks win, no step cap.
        target_f32_bytes = 8 * 1024 * 1024
        vmem_limit = 96 * 1024 * 1024
        min_steps = 1
    return target_f32_bytes // 4, vmem_limit, min_steps


# ---------------------------------------------------------------------------
# Kernels
# ---------------------------------------------------------------------------
def _ln_last_kernel(x_ref, wb_ref, o_ref, *, eps):
    # x_ref: (block_rows, C); normalize over the last (lane) axis.
    x = x_ref[...].astype(jnp.float32)
    wb = wb_ref[...].astype(jnp.float32)       # (2, C): row 0 = weight, row 1 = bias
    w = wb[0:1, :]
    b = wb[1:2, :]
    mean = jnp.mean(x, axis=-1, keepdims=True)
    xc = x - mean
    var = jnp.mean(xc * xc, axis=-1, keepdims=True)   # biased variance
    inv = jax.lax.rsqrt(var + eps)
    o_ref[...] = (xc * inv * w + b).astype(o_ref.dtype)


def _ln_last_packed_kernel(x_ref, wb_ref, seg_ref, o_ref, *, inv_c, eps):
    # x_ref: (block_rows, 128), each packed row holds k = 128 // C original rows.
    # seg_ref: (128, 128) block-diagonal ones; X @ seg = per-segment sums broadcast
    # back over every lane of the segment (runs on the otherwise idle MXU).
    x = x_ref[...].astype(jnp.float32)
    wb = wb_ref[...].astype(jnp.float32)       # (2, 128): k-tiled weight / bias
    seg = seg_ref[...]
    w = wb[0:1, :]
    b = wb[1:2, :]
    mean = jnp.dot(x, seg, preferred_element_type=jnp.float32) * inv_c
    xc = x - mean
    var = jnp.dot(xc * xc, seg, preferred_element_type=jnp.float32) * inv_c
    inv = jax.lax.rsqrt(var + eps)
    o_ref[...] = (xc * inv * w + b).astype(o_ref.dtype)


def _ln_first_kernel(x_ref, wb_ref, o_ref, *, eps):
    # x_ref: (block_n, C, tile_hw) — C on sublanes, spatial on lanes; reduce over C.
    x = x_ref[...].astype(jnp.float32)
    wb = wb_ref[...].astype(jnp.float32)       # (2, C, 1)
    w = wb[0:1]
    b = wb[1:2]
    mean = jnp.mean(x, axis=1, keepdims=True)
    xc = x - mean
    var = jnp.mean(xc * xc, axis=1, keepdims=True)    # biased variance
    inv = jax.lax.rsqrt(var + eps)
    o_ref[...] = (xc * inv * w + b).astype(o_ref.dtype)


# ---------------------------------------------------------------------------
# Tile-size selection
# ---------------------------------------------------------------------------
def _pick_block_rows(rows, c, target_elems, min_steps):
    """Rows per block (channels-last). Multiple of 8 unless it is the full dim."""
    if rows <= 8:
        return rows
    br = max(8, _round_down(target_elems // max(c, 1), 8))
    if min_steps > 1 and rows >= min_steps * 8:
        # Keep >= min_steps grid steps so both v7x TensorCores get work.
        br = min(br, max(8, _round_down(_cdiv(rows, min_steps), 8)))
    if br >= rows:
        return rows
    return br


def _pick_first_tiles(n, c, hw, target_elems, min_steps):
    """(block_n, tile_hw) for channels-first blocks of shape (block_n, C, tile_hw)."""
    img_elems = c * hw
    if img_elems >= target_elems:
        block_n = 1
        if hw <= 128:
            tile_hw = hw
        else:
            tile_hw = max(128, _round_down(target_elems // max(c, 1), 128))
            if tile_hw >= hw:
                tile_hw = hw
    else:
        tile_hw = hw
        block_n = max(1, min(n, target_elems // img_elems))
    if min_steps > 1:
        steps = _cdiv(n, block_n) * _cdiv(hw, tile_hw)
        if steps < min_steps:
            if n >= min_steps:
                block_n = max(1, n // min_steps)
            elif hw > 128:
                tile_hw = max(128, _round_down(_cdiv(hw, min_steps), 128))
    return block_n, tile_hw


# ---------------------------------------------------------------------------
# pallas_call wrappers
# ---------------------------------------------------------------------------
def _layernorm_last(x2d, wb, eps, budget):
    rows, c = x2d.shape
    itemsize = jnp.dtype(x2d.dtype).itemsize
    target_elems, vmem_limit, min_steps = budget
    block_rows = _pick_block_rows(rows, c, target_elems, min_steps)
    grid = (_cdiv(rows, block_rows),)

    cost = pl.CostEstimate(
        flops=int(8 * rows * c),
        transcendentals=int(rows),
        bytes_accessed=int(2 * rows * c * itemsize + 2 * c * itemsize),
    )

    return pl.pallas_call(
        functools.partial(_ln_last_kernel, eps=eps),
        out_shape=jax.ShapeDtypeStruct((rows, c), x2d.dtype),
        grid_spec=pltpu.PrefetchScalarGridSpec(
            num_scalar_prefetch=0,
            grid=grid,
            in_specs=[
                pl.BlockSpec((block_rows, c), lambda i: (i, 0)),
                pl.BlockSpec((2, c), lambda i: (0, 0)),   # constant index -> DMA'd once
            ],
            out_specs=pl.BlockSpec((block_rows, c), lambda i: (i, 0)),
        ),
        compiler_params=pltpu.CompilerParams(
            dimension_semantics=("parallel",),
            vmem_limit_bytes=vmem_limit,
        ),
        cost_estimate=cost,
    )(x2d, wb)


def _layernorm_last_packed(x2d, wb, seg, c, eps, budget):
    rows_p, kc = x2d.shape
    itemsize = jnp.dtype(x2d.dtype).itemsize
    target_elems, vmem_limit, min_steps = budget
    block_rows = _pick_block_rows(rows_p, kc, target_elems, min_steps)
    grid = (_cdiv(rows_p, block_rows),)

    cost = pl.CostEstimate(
        flops=int(8 * rows_p * kc + 4 * rows_p * kc * kc),
        transcendentals=int(rows_p * (kc // c)),
        bytes_accessed=int(2 * rows_p * kc * itemsize + (2 * kc + kc * kc) * 4),
    )

    return pl.pallas_call(
        functools.partial(_ln_last_packed_kernel, inv_c=1.0 / c, eps=eps),
        out_shape=jax.ShapeDtypeStruct((rows_p, kc), x2d.dtype),
        grid_spec=pltpu.PrefetchScalarGridSpec(
            num_scalar_prefetch=0,
            grid=grid,
            in_specs=[
                pl.BlockSpec((block_rows, kc), lambda i: (i, 0)),
                pl.BlockSpec((2, kc), lambda i: (0, 0)),    # DMA'd once
                pl.BlockSpec((kc, kc), lambda i: (0, 0)),   # DMA'd once
            ],
            out_specs=pl.BlockSpec((block_rows, kc), lambda i: (i, 0)),
        ),
        compiler_params=pltpu.CompilerParams(
            dimension_semantics=("parallel",),
            vmem_limit_bytes=vmem_limit,
        ),
        cost_estimate=cost,
    )(x2d, wb, seg)


def _layernorm_first(x3d, wb3d, eps, budget):
    n, c, hw = x3d.shape
    itemsize = jnp.dtype(x3d.dtype).itemsize
    target_elems, vmem_limit, min_steps = budget
    block_n, tile_hw = _pick_first_tiles(n, c, hw, target_elems, min_steps)
    grid = (_cdiv(n, block_n), _cdiv(hw, tile_hw))

    cost = pl.CostEstimate(
        flops=int(8 * n * c * hw),
        transcendentals=int(n * hw),
        bytes_accessed=int(2 * n * c * hw * itemsize + 2 * c * itemsize),
    )

    return pl.pallas_call(
        functools.partial(_ln_first_kernel, eps=eps),
        out_shape=jax.ShapeDtypeStruct((n, c, hw), x3d.dtype),
        grid_spec=pltpu.PrefetchScalarGridSpec(
            num_scalar_prefetch=0,
            grid=grid,
            in_specs=[
                pl.BlockSpec((block_n, c, tile_hw), lambda i, j: (i, 0, j)),
                pl.BlockSpec((2, c, 1), lambda i, j: (0, 0, 0)),   # DMA'd once
            ],
            out_specs=pl.BlockSpec((block_n, c, tile_hw), lambda i, j: (i, 0, j)),
        ),
        compiler_params=pltpu.CompilerParams(
            dimension_semantics=("parallel", "parallel"),
            vmem_limit_bytes=vmem_limit,
        ),
        cost_estimate=cost,
    )(x3d, wb3d)


def layer_norm(x, weight, bias, eps=1e-6, channel_pos="last"):
    """Matches the PyTorch LayerNorm module's forward.

    channel_pos='last'  : normalize last dim of x (any leading dims).
    channel_pos='first' : x is (N, C, *spatial); normalize channel dim (dim 1).
    """
    budget = _tpu_budget()
    if channel_pos == "last":
        c = x.shape[-1]
        lead = x.shape[:-1]
        rows = 1
        for s in lead:
            rows *= s
        # Lane-dense packing when C < 128 and 128 % C == 0: fold k = 128 // C rows
        # into one 128-wide packed row (free reshape) and do the segment reductions
        # on the MXU. Avoids masked partial stores for small C.
        use_packed = (c >= 1 and c < 128 and 128 % c == 0
                      and rows > 0 and rows % (128 // c) == 0)
        if use_packed:
            k = 128 // c
            kc = 128
            wb = jnp.stack([jnp.tile(weight.reshape(c), k),
                            jnp.tile(bias.reshape(c), k)])
            idx = jnp.arange(kc, dtype=jnp.int32) // c
            seg = (idx[:, None] == idx[None, :]).astype(jnp.float32)
            y2d = _layernorm_last_packed(x.reshape(rows // k, kc), wb, seg, c, eps, budget)
        else:
            wb = jnp.stack([weight.reshape(c), bias.reshape(c)])
            y2d = _layernorm_last(x.reshape(-1, c), wb, eps, budget)
        return y2d.reshape(*lead, c)
    elif channel_pos == "first":
        n, c = x.shape[0], x.shape[1]
        spatial = x.shape[2:]
        hw = 1
        for s in spatial:
            hw *= s
        wb3d = jnp.stack([weight.reshape(c), bias.reshape(c)]).reshape(2, c, 1)
        # TODO(synk): for C < 8 one could additionally fold 8//C batch images onto the
        # sublane axis to avoid sublane padding; skipped — the kernel is HBM-bound and
        # stores are already lane-dense, so the win is only VMEM density.
        y3d = _layernorm_first(x.reshape(n, c, hw), wb3d, eps, budget)
        return y3d.reshape((n, c) + spatial)
    else:
        raise NotImplementedError(channel_pos)


# ---------------------------------------------------------------------------
# Reference + test
# ---------------------------------------------------------------------------
def _reference_layer_norm(x, weight, bias, eps, channel_pos):
    """Pure-JAX reference mirroring the PyTorch forward exactly."""
    if channel_pos == "last":
        u = jnp.mean(x, axis=-1, keepdims=True)
        s = jnp.mean((x - u) ** 2, axis=-1, keepdims=True)
        xn = (x - u) / jnp.sqrt(s + eps)
        return weight * xn + bias
    else:
        u = jnp.mean(x, axis=1, keepdims=True)
        s = jnp.mean((x - u) ** 2, axis=1, keepdims=True)
        xn = (x - u) / jnp.sqrt(s + eps)
        return weight[None, :, None, None] * xn + bias[None, :, None, None]


if __name__ == "__main__":
    key = jax.random.PRNGKey(0)
    k1, k2 = jax.random.split(key)

    eps = 1e-6

    # --- channel_pos='first': NCHW input (batch=2, channels=4, spatial=16) ---
    c_first = 4
    x_first = jax.random.normal(k1, (2, c_first, 16, 16), dtype=jnp.float32)
    w_first = jnp.ones((c_first,), dtype=jnp.float32)     # matches torch.ones init
    b_first = jnp.zeros((c_first,), dtype=jnp.float32)    # matches torch.zeros init

    y_first = layer_norm(x_first, w_first, b_first, eps=eps, channel_pos="first")
    y_first = jax.block_until_ready(y_first)
    ref_first = _reference_layer_norm(x_first, w_first, b_first, eps, "first")
    assert y_first.shape == x_first.shape
    assert jnp.allclose(y_first, ref_first, atol=1e-5, rtol=1e-5)

    # --- channel_pos='last': (batch=2, seq=8, hidden=32) -> packed MXU path ---
    c_last = 32
    x_last = jax.random.normal(k2, (2, 8, c_last), dtype=jnp.float32)
    w_last = jnp.ones((c_last,), dtype=jnp.float32)
    b_last = jnp.zeros((c_last,), dtype=jnp.float32)

    y_last = layer_norm(x_last, w_last, b_last, eps=eps, channel_pos="last")
    y_last = jax.block_until_ready(y_last)
    ref_last = _reference_layer_norm(x_last, w_last, b_last, eps, "last")
    assert y_last.shape == x_last.shape
    assert jnp.allclose(y_last, ref_last, atol=1e-5, rtol=1e-5)

    print("KERNEL_OK")
</pallas_src>

<mosaic_0001>
module attributes {stable_mosaic.version = 11 : i64} {
  func.func @_ln_first_kernel(%arg0: i32, %arg1: i32, %arg2: memref<2x4x256xf32, #tpu.memory_space<vmem>>, %arg3: memref<2x4x1xf32, #tpu.memory_space<vmem>>, %arg4: memref<2x4x256xf32, #tpu.memory_space<vmem>>) attributes {dimension_semantics = [#tpu.dimension_semantics<parallel>, #tpu.dimension_semantics<parallel>], iteration_bounds = array<i64: 1, 1>, scalar_prefetch = 0 : i64, scratch_operands = 0 : i64, tpu.core_type = #tpu.core_type<tc>, window_params = [{transform_indices = @transform_0, window_bounds = array<i64: 2, 4, 256>}, {pipeline_mode = #tpu.pipeline_mode<synchronous>, transform_indices = @transform_1, window_bounds = array<i64: 2, 4, 1>}, {transform_indices = @transform_2, window_bounds = array<i64: 2, 4, 256>}]} {
    %c0 = arith.constant 0 : index
    %c0_0 = arith.constant 0 : index
    %c0_1 = arith.constant 0 : index
    %0 = vector.load %arg2[%c0, %c0_0, %c0_1] : memref<2x4x256xf32, #tpu.memory_space<vmem>>, vector<2x4x256xf32>
    %c0_2 = arith.constant 0 : index
    %c0_3 = arith.constant 0 : index
    %c0_4 = arith.constant 0 : index
    %1 = vector.load %arg3[%c0_2, %c0_3, %c0_4] : memref<2x4x1xf32, #tpu.memory_space<vmem>>, vector<2x4x1xf32>
    %2 = vector.extract_strided_slice %1 {offsets = [0, 0, 0], sizes = [1, 4, 1], strides = [1, 1, 1]} : vector<2x4x1xf32> to vector<1x4x1xf32>
    %3 = vector.extract_strided_slice %1 {offsets = [1, 0, 0], sizes = [1, 4, 1], strides = [1, 1, 1]} : vector<2x4x1xf32> to vector<1x4x1xf32>
    %cst = arith.constant dense<0.000000e+00> : vector<2x256xf32>
    %4 = vector.multi_reduction <add>, %0, %cst [1] : vector<2x4x256xf32> to vector<2x256xf32>
    %5 = vector.shape_cast %4 : vector<2x256xf32> to vector<2x1x256xf32>
    %cst_5 = arith.constant 4.000000e+00 : f32
    %6 = vector.broadcast %cst_5 : f32 to vector<2x1x256xf32>
    %7 = arith.divf %5, %6 : vector<2x1x256xf32>
    %8 = vector.broadcast %7 : vector<2x1x256xf32> to vector<2x4x256xf32>
    %9 = arith.subf %0, %8 : vector<2x4x256xf32>
    %10 = arith.mulf %9, %9 : vector<2x4x256xf32>
    %cst_6 = arith.constant dense<0.000000e+00> : vector<2x256xf32>
    %11 = vector.multi_reduction <add>, %10, %cst_6 [1] : vector<2x4x256xf32> to vector<2x256xf32>
    %12 = vector.shape_cast %11 : vector<2x256xf32> to vector<2x1x256xf32>
    %cst_7 = arith.constant 4.000000e+00 : f32
    %13 = vector.broadcast %cst_7 : f32 to vector<2x1x256xf32>
    %14 = arith.divf %12, %13 : vector<2x1x256xf32>
    %cst_8 = arith.constant 9.99999997E-7 : f32
    %15 = vector.broadcast %cst_8 : f32 to vector<2x1x256xf32>
    %16 = arith.addf %14, %15 : vector<2x1x256xf32>
    %17 = math.rsqrt %16 : vector<2x1x256xf32>
    %18 = vector.broadcast %17 : vector<2x1x256xf32> to vector<2x4x256xf32>
    %19 = arith.mulf %9, %18 : vector<2x4x256xf32>
    %20 = vector.broadcast %2 : vector<1x4x1xf32> to vector<2x4x256xf32>
    %21 = arith.mulf %19, %20 : vector<2x4x256xf32>
    %22 = vector.broadcast %3 : vector<1x4x1xf32> to vector<2x4x256xf32>
    %23 = arith.addf %21, %22 : vector<2x4x256xf32>
    %c0_9 = arith.constant 0 : index
    %c0_10 = arith.constant 0 : index
    %c0_11 = arith.constant 0 : index
    %24 = vector.load %arg4[%c0_9, %c0_10, %c0_11] : memref<2x4x256xf32, #tpu.memory_space<vmem>>, vector<2x4x256xf32>
    tpu.vector_store %arg4[%c0_9, %c0_10, %c0_11], %23 {strides = array<i32>} : memref<2x4x256xf32, #tpu.memory_space<vmem>>, vector<2x4x256xf32>,
    return
  }
  func.func @transform_0(%arg0: i32, %arg1: i32) -> (i32, i32, i32) {
    %c0_i32 = arith.constant 0 : i32
    %c0_i32_0 = arith.constant 0 : i32
    return %arg0, %c0_i32, %arg1 : i32, i32, i32
  }
  func.func @transform_1(%arg0: i32, %arg1: i32) -> (i32, i32, i32) {
    %c0_i32 = arith.constant 0 : i32
    %c0_i32_0 = arith.constant 0 : i32
    %c0_i32_1 = arith.constant 0 : i32
    %c0_i32_2 = arith.constant 0 : i32
    return %c0_i32, %c0_i32_0, %c0_i32_1 : i32, i32, i32
  }
  func.func @transform_2(%arg0: i32, %arg1: i32) -> (i32, i32, i32) {
    %c0_i32 = arith.constant 0 : i32
    %c0_i32_0 = arith.constant 0 : i32
    return %arg0, %c0_i32, %arg1 : i32, i32, i32
  }
}

</mosaic_0001>

<bundles_post_ra>
// kernel: tpu_custom_call.1
= control target key start
LH: loop header
LB: loop body
LE: loop exit
PB: predicated region body
PF: predicated region fallthrough
CT: control target
= control target key end

     0   :  { %7 = vsyncpa [#allocation3], 0  ;;  %s366_s0 = inlined_call_operand.hbm [shape: f32[2,4,256], index: 0, kind: input, shape index: {}]   ;;  %s367_s1 = inlined_call_operand.hbm [shape: f32[2,4,1], index: 1, kind: input, shape index: {}]   ;;  %s368_s2 = inlined_call_operand.hbm [shape: f32[2,4,256], index: 2, kind: output, shape index: {}]  }
   0x1   :  { %8 = vsyncpa [#allocation6], 0 }
   0x2   :  { %9 = vsyncpa [#allocation4], 0  ;;  %s292_s9 = smov [#allocation2]   ;;  %s220_s13 = scalar_lea.hbm %s366_s0, 256 }
   0x3   :  { %s15_s10 = sshll.u32 %s292_s9, 4  ;;  %p221_p0 = scmp.ne.s32.totalorder %s366_s0, %s220_s13  ;;  %s16_s10 = int_to_ptr.vmem [resolvable:$true] %s15_s10 }
   0x4   :  { %p224_p1 = scmp.lt.u32.totalorder %s220_s13, %s366_s0 }
   0x6   :  { %p226_p2 = pnand %p224_p1, %p221_p0 }
   0x8   :  { %229 = shalt.err (!%p226_p2)
}
   0x9   :  { %s230_s18 = scalar_lea.vmem %s16_s10, 256  ;;  %p235_p4 = scmp.lt.s32.totalorder %s16_s10, %s16_s10 }
   0xa   :  { %p231_p3 = scmp.ne.s32.totalorder %s16_s10, %s230_s18  ;;  %p236_p5 = scmp.lt.s32.totalorder %s230_s18, %s230_s18 }
   0xc   :  { %p237_p6 = por %p236_p5, %p235_p4 }
   0xe   :  { %p238_p7 = pnand %p237_p6, %p231_p3 }
  0x10   :  { %241 = shalt.err (!%p238_p7)
}
  0x11   :  { %s293_s19 = smov 128   ;;  %s294_s20 = smov 8  }
  0x12   :  { %21 = dma.hbm_to_vmem [thread:$0]  %s366_s0, 256, %s16_s10, [#allocation3], %s293_s19, %s293_s19, %s294_s20  }
  0x13   :  { %s295_s23 = smov [#allocation5]   ;;  %s242_s27 = scalar_lea.hbm %s367_s1, 128 }
  0x14   :  { %s27_s24 = sshll.u32 %s295_s23, 4  ;;  %p243_p8 = scmp.ne.s32.totalorder %s367_s1, %s242_s27  ;;  %s28_s24 = int_to_ptr.vmem [resolvable:$true] %s27_s24 }
  0x15   :  { %p246_p9 = scmp.lt.u32.totalorder %s242_s27, %s367_s1 }
  0x17   :  { %p248_p10 = pnand %p246_p9, %p243_p8 }
  0x19   :  { %251 = shalt.err (!%p248_p10)
}
  0x1a   :  { %s252_s4 = scalar_lea.vmem %s28_s24, 128  ;;  %p257_p12 = scmp.lt.s32.totalorder %s28_s24, %s28_s24 }
  0x1b   :  { %p253_p11 = scmp.ne.s32.totalorder %s28_s24, %s252_s4  ;;  %p258_p13 = scmp.lt.s32.totalorder %s252_s4, %s252_s4 }
  0x1d   :  { %p259_p0 = por %p258_p13, %p257_p12 }
  0x1f   :  { %p260_p1 = pnand %p259_p0, %p253_p11 }
  0x21   :  { %263 = shalt.err (!%p260_p1)
}
  0x22   :  { %s296_s0 = smov 64   ;;  %s297_s5 = smov 4  }
  0x23   :  { %33 = dma.hbm_to_vmem [thread:$0]  %s367_s1, 128, %s28_s24, [#allocation6], %s296_s0, %s296_s0, %s297_s5  }
  0x24   :  { %286 = dma.done.wait [#allocation3], 256  }
  0x25   :  { %287 = vsyncadd [#allocation3], 4294967040 }
  0x26   :  { %288 = dma.done.wait [#allocation6], 128  }
  0x27   :  { %289 = vsyncadd [#allocation6], 4294967168  ;;  %v298_v0 = vmov 0   ;;  %v42_v1 = vld [vmem:[#allocation5] sm:$0xf]  ;;  %v40_v3 = vld [vmem:[#allocation2] sm:$0xff] }
  0x28   :  { %209 = vset.pattern.permute.xlu0 %v298_v0  ;;  %v43_v2 = vld [vmem:[#allocation5 + $0x4] sm:$0xf]  ;;  %v41_v4 = vld [vmem:[#allocation2 + $0x8] sm:$0xff]  ;;  %v46_v5 = vcombine.high %v40_v3, %v40_v3  ;;  %vm50_vm0 = vcmask 1043456   ;;  %s300_s1 = smov [#allocation7]  }
  0x29   :  { %154 = vperm.xlu0 %209, %v42_v1   ;;  %v47_v6 = vcombine.high %v41_v4, %v41_v4  ;;  %v51_v7 = vsel %vm50_vm0, %v40_v3, 0.0  ;;  %v65_v9 = vsel %vm50_vm0, %v41_v4, 0.0  ;;  %s187_s8 = sshll.u32 %s300_s1, 4  ;;  %s188_s8 = int_to_ptr.vmem [resolvable:$true] %s187_s8 }
  0x2a   :  { %v58_v8 = vsel %vm50_vm0, %v46_v5, 0.0  ;;  %v52_v11 = vrot.slane %v51_v7, 4  ;;  %v66_v13 = vrot.slane %v65_v9, 4  ;;  %s264_s9 = scalar_lea.vmem %s188_s8, 256  ;;  %p269_p3 = scmp.lt.s32.totalorder %s188_s8, %s188_s8 }
  0x2b   :  { %v72_v10 = vsel %vm50_vm0, %v47_v6, 0.0  ;;  %v59_v12 = vrot.slane %v58_v8, 4  ;;  %p265_p2 = scmp.ne.s32.totalorder %s188_s8, %s264_s9  ;;  %p270_p4 = scmp.lt.s32.totalorder %s264_s9, %s264_s9 }
  0x2c   :  { %v73_v14 = vrot.slane %v72_v10, 4  ;;  %v53_v15 = vadd.f32 %v52_v11, %v51_v7  ;;  %v67_v17 = vadd.f32 %v66_v13, %v65_v9 }
  0x2d   :  { %168 = vperm.xlu0 %209, %v43_v2   ;;  %v60_v16 = vadd.f32 %v59_v12, %v58_v8  ;;  %p271_p5 = por %p270_p4, %p269_p3 }
  0x2e   :  { %v74_v18 = vadd.f32 %v73_v14, %v72_v10  ;;  %v54_v19 = vrot.slane %v53_v15, 2  ;;  %v68_v21 = vrot.slane %v67_v17, 2 }
  0x2f   :  { %v61_v20 = vrot.slane %v60_v16, 2  ;;  %p272_p6 = pnand %p271_p5, %p265_p2 }
  0x30   :  { %v75_v22 = vrot.slane %v74_v18, 2  ;;  %v55_v23 = vadd.f32 %v54_v19, %v53_v15  ;;  %v69_v25 = vadd.f32 %v68_v21, %v67_v17  ;;  %v299_v19 = vmov 839922192  }
  0x31   :  { %v62_v24 = vadd.f32 %v61_v20, %v60_v16  ;;  %v157_v20 = vunpack.c.l.s4 %v299_v19  ;;  %v159_v21 = vlaneseq }
  0x32   :  { %v76_v26 = vadd.f32 %v75_v22, %v74_v18  ;;  %v56_v27 = vrot.slane %v55_v23, 1  ;;  %v70_v29 = vrot.slane %v69_v25, 1 }
  0x33   :  { %v63_v28 = vrot.slane %v62_v24, 1 }
  0x34   :  { %v77_v30 = vrot.slane %v76_v26, 1  ;;  %v57_v31 = vadd.f32 %v56_v27, %v55_v23  ;;  %v71_v33 = vadd.f32 %v70_v29, %v69_v25  ;;  %v158_v25 = vunpack.c.0.s8 %v157_v20 }
  0x35   :  { %v64_v32 = vadd.f32 %v63_v28, %v62_v24 }
  0x36   :  { %v78_v34 = vadd.f32 %v77_v30, %v76_v26  ;;  %v80_v35 = vmul.f32 0.25, %v57_v31  ;;  %v82_v37 = vmul.f32 0.25, %v71_v33  ;;  %v160_v26 = vshrl.u32 %v159_v21, 7 }
  0x37   :  { %v81_v36 = vmul.f32 0.25, %v64_v32 }
  0x38   :  { %v83_v38 = vmul.f32 0.25, %v78_v34  ;;  %v161_v28 = vsub.s32 %v158_v25, %v160_v26 }
  0x39   :  { %v88_v39 = vcombine.low %v80_v35, %v81_v36 }
  0x3a   :  { %v89_v40 = vcombine.low %v82_v37, %v83_v38 }
  0x3b   :  { %v92_v41 = vsub.f32 %v40_v3, %v88_v39 }
  0x3c   :  { %v93_v42 = vsub.f32 %v41_v4, %v89_v40 }
  0x3d   :  { %v94_v43 = vmul.f32 %v92_v41, %v92_v41 }
  0x3e   :  { %v95_v44 = vmul.f32 %v93_v42, %v93_v42 }
  0x3f   :  { %v98_v45 = vcombine.high %v94_v43, %v94_v43  ;;  %v102_v47 = vsel %vm50_vm0, %v94_v43, 0.0 }
  0x40   :  { %v99_v46 = vcombine.high %v95_v44, %v95_v44  ;;  %v116_v48 = vsel %vm50_vm0, %v95_v44, 0.0  ;;  %v103_v50 = vrot.slane %v102_v47, 4 }
  0x41   :  { %v109_v49 = vsel %vm50_vm0, %v98_v45, 0.0  ;;  %v117_v52 = vrot.slane %v116_v48, 4 }
  0x42   :  { %v123_v51 = vsel %vm50_vm0, %v99_v46, 0.0  ;;  %v110_v53 = vrot.slane %v109_v49, 4  ;;  %v104_v55 = vadd.f32 %v103_v50, %v102_v47 }
  0x43   :  { %v124_v54 = vrot.slane %v123_v51, 4  ;;  %v118_v56 = vadd.f32 %v117_v52, %v116_v48 }
  0x44   :  { %v111_v57 = vadd.f32 %v110_v53, %v109_v49  ;;  %v105_v59 = vrot.slane %v104_v55, 2 }
  0x45   :  { %v125_v58 = vadd.f32 %v124_v54, %v123_v51  ;;  %v119_v60 = vrot.slane %v118_v56, 2 }
  0x46   :  { %v112_v61 = vrot.slane %v111_v57, 2  ;;  %v106_v63 = vadd.f32 %v105_v59, %v104_v55 }
  0x47   :  { %v126_v62 = vrot.slane %v125_v58, 2  ;;  %v120_v0 = vadd.f32 %v119_v60, %v118_v56 }
  0x48   :  { %v113_v1 = vadd.f32 %v112_v61, %v111_v57  ;;  %v107_v3 = vrot.slane %v106_v63, 1 }
  0x49   :  { %v127_v2 = vadd.f32 %v126_v62, %v125_v58  ;;  %v121_v4 = vrot.slane %v120_v0, 1 }
  0x4a   :  { %v114_v5 = vrot.slane %v113_v1, 1  ;;  %v108_v7 = vadd.f32 %v107_v3, %v106_v63 }
  0x4b   :  { %v128_v6 = vrot.slane %v127_v2, 1  ;;  %v122_v8 = vadd.f32 %v121_v4, %v120_v0 }
  0x4c   :  { %v115_v9 = vadd.f32 %v114_v5, %v113_v1  ;;  %v130_v11 = vmul.f32 0.25, %v108_v7 }
  0x4d   :  { %v129_v10 = vadd.f32 %v128_v6, %v127_v2  ;;  %v132_v12 = vmul.f32 0.25, %v122_v8 }
  0x4e   :  { %v131_v13 = vmul.f32 0.25, %v115_v9  ;;  %v134_v15 = vadd.f32 1e-06, %v130_v11 }
  0x4f   :  { %v133_v14 = vmul.f32 0.25, %v129_v10  ;;  %v136_v16 = vadd.f32 1e-06, %v132_v12 }
  0x50   :  { %v135_v17 = vadd.f32 1e-06, %v131_v13  ;;  %212 = vrsqrt.f32 %v134_v15 }
  0x51   :  { %v137_v18 = vadd.f32 1e-06, %v133_v14  ;;  %214 = vrsqrt.f32 %v136_v16 }
  0x52   :  { %216 = vrsqrt.f32 %v135_v17 }
  0x53   :  { %218 = vrsqrt.f32 %v137_v18 }
  0x5a   :  { %v213_v22 = vpop.eup %212 }
  0x5b   :  { %v215_v23 = vpop.eup %214 }
  0x5c   :  { %v217_v24 = vpop.eup %216 }
  0x5d   :  { %v219_v27 = vpop.eup %218  ;;  %v146_v29 = vcombine.low %v213_v22, %v217_v24 }
  0x5e   :  { %v147_v30 = vcombine.low %v215_v23, %v219_v27 }
  0x5f   :  { %v150_v32 = vmul.f32 %v146_v29, %v92_v41 }
  0x60   :  { %v151_v33 = vmul.f32 %v147_v30, %v93_v42 }
  0xa8   :  { %v155_v31 = vpop.permute.xlu0 %154 }
  0xa9   :  { %v162_v34 = vrot.slane %v155_v31, %v161_v28 }
  0xab   :  { %v164_v36 = vmul.f32 %v162_v34, %v150_v32  ;;  %v165_v37 = vmul.f32 %v162_v34, %v151_v33 }
  0xac   :  { %v169_v35 = vpop.permute.xlu0 %168 }
  0xad   :  { %v176_v38 = vrot.slane %v169_v35, %v161_v28 }
  0xaf   :  { %v178_v39 = vadd.f32 %v176_v38, %v164_v36  ;;  %v179_v40 = vadd.f32 %v176_v38, %v165_v37 }
  0xb1   :  { %180 = vst [vmem:[#allocation7] sm:$0xff] %v178_v39  ;;  %181 = vst [vmem:[#allocation7 + $0x8] sm:$0xff] %v179_v40 }
  0xb2   :  { %275 = shalt.err (!%p272_p6)
}
  0xb3   :  { %s276_s12 = scalar_lea.hbm %s368_s2, 256 }
  0xb4   :  { %p277_p7 = scmp.ne.s32.totalorder %s368_s2, %s276_s12  ;;  %p280_p8 = scmp.lt.u32.totalorder %s276_s12, %s368_s2 }
  0xb6   :  { %p282_p9 = pnand %p280_p8, %p277_p7 }
  0xb8   :  { %285 = shalt.err (!%p282_p9)
}
  0xb9   :  { %193 = dma.vmem_to_hbm [thread:$0]  %s188_s8, 256, %s368_s2, [#allocation4], %s293_s19, %s293_s19, %s294_s20  }
  0xba   :  { %290 = dma.done.wait [#allocation4], 256  }
  0xbb   :  { %291 = vsyncadd [#allocation4], 4294967040 }
  0xbc   :  { %197 = vsyncpa [#allocation3], 1 }
  0xbd   :  { %198 = vsyncpa [#allocation6], 1 }
  0xbe   :  { %199 = vsyncpa [#allocation4], 1 }

</bundles_post_ra>
